<compile_context>
chip_gen: v7x
topology: tpu7x:2x2x1
jax: 0.10.0
libtpu: 0.0.40
codegen_flags: <defaults>
</compile_context>

<pallas_src>
import math

import jax
import jax.numpy as jnp
from jax.experimental import pallas as pl
from jax.experimental.pallas import tpu as pltpu


def _round_up(x, m):
    return (x + m - 1) // m * m


def rank_net_kernel(sub_ref, rev_ref, wq_ref, bq_ref, wk_ref, out_ref):
    sub = sub_ref[...]            # (bt, T)      bf16
    rev = rev_ref[...]            # (bt, N, T)   bf16
    wq = wq_ref[...]              # (T, A)       bf16, pre-transposed, pre-scaled by 1/sqrt(A)
    bq = bq_ref[...]              # (1, A)       f32,  pre-scaled by 1/sqrt(A)
    wk = wk_ref[...]              # (A, T)       f32,  original torch layout (no transpose)

    # Q / sqrt(A): small MXU matmul with f32 accumulation.
    q = jnp.dot(sub, wq, preferred_element_type=jnp.float32) + bq          # (bt, A)

    # Fused score: e[b, n] = (Q[b]/sqrt(A)) . (W_K @ rev[b, n]).
    # K = rev @ W_K^T + b_K is never materialized; the b_K term contributes a
    # per-row constant Q[b].b_K which softmax over n cancels exactly.
    u = jnp.dot(q, wk, preferred_element_type=jnp.float32)                 # (bt, T)
    u3 = u.astype(rev.dtype)[:, None, :]                                   # (bt, 1, T)
    e = jnp.einsum("bqt,bnt->bqn", u3, rev,
                   preferred_element_type=jnp.float32)                     # (bt, 1, N)

    # Exact softmax over the reviewer axis (torch dim=2); exact divide so
    # every row sums to 1 to f32 precision.
    m = jnp.max(e, axis=-1, keepdims=True)
    p = jnp.exp(e - m)
    denom = jnp.sum(p, axis=-1, keepdims=True)
    out_ref[...] = (p / denom).astype(out_ref.dtype)


def _vmem_bytes_estimate(bt, n, t, a):
    """Rough VMEM footprint of one grid step: (8,128)-padded blocks,
    double-buffered streamed blocks, plus in-kernel f32 temporaries."""
    lane = lambda d: _round_up(max(d, 1), 128)
    sl = lambda d: _round_up(max(d, 1), 8)
    rev_blk = bt * sl(n) * lane(t) * 2                     # bf16
    sub_blk = sl(bt) * lane(t) * 2                         # bf16
    out_blk = bt * sl(1) * lane(n) * 4                     # f32
    weights = sl(t) * lane(a) * 2 + sl(1) * lane(a) * 4 + sl(a) * lane(t) * 4
    temps = (sl(bt) * lane(a) * 4 + sl(bt) * lane(t) * 4   # q, u
             + 3 * bt * sl(1) * lane(n) * 4)               # e, p, out temp
    return 2 * (rev_blk + sub_blk + out_blk) + weights + temps


def rank_net_forward(submitter_emb, reviewer_emb, w_q, b_q, w_k, b_k, *,
                     b_tile=256, vmem_budget_bytes=40 * 1024 * 1024):
    """submitter_emb (B,T), reviewer_emb (B,N,T), w_* (A,T) torch layout, b_* (A,)."""
    B, T = submitter_emb.shape
    _, N, _ = reviewer_emb.shape
    A = w_q.shape[0]

    # --- batch-tile selection: real tuning knob, sized against VMEM ----------
    bt = max(8, min(b_tile, _round_up(B, 8)))
    if B > 16:
        # keep >= 2 grid steps so both v7x TensorCores get work
        bt = min(bt, _round_up(-(-B // 2), 8))
    while _vmem_bytes_estimate(bt, N, T, A) > vmem_budget_bytes and bt > 8:
        bt = max(8, _round_up(bt // 2, 8))
    # TODO(synk): for very large reviewer sets N, additionally tile N with an
    # online softmax instead of holding the whole (bt, N, T) block in VMEM.
    B_pad = _round_up(B, bt)

    bf16, f32 = jnp.bfloat16, jnp.float32

    # --- host-side layout plumbing (no N/T padding of the big tensor) --------
    sub_p = jnp.pad(submitter_emb.astype(bf16), ((0, B_pad - B), (0, 0)))
    rev_p = jnp.pad(reviewer_emb.astype(bf16), ((0, B_pad - B), (0, 0), (0, 0)))

    scale = 1.0 / math.sqrt(A)
    wq_t = (w_q.astype(f32).T * scale).astype(bf16)        # (T, A), pre-scaled
    bq_s = (b_q.astype(f32) * scale).reshape(1, A)         # (1, A), pre-scaled
    wk_m = w_k.astype(f32)                                 # (A, T) as-is
    del b_k  # shifts every score of a row by the same constant -> softmax-invariant

    vmem_limit = int(min(
        64 * 1024 * 1024,
        max(int(_vmem_bytes_estimate(bt, N, T, A) * 1.5) + (2 << 20),
            32 * 1024 * 1024)))

    cost = pl.CostEstimate(
        flops=2 * B_pad * (T * A + A * T + N * T) + 6 * B_pad * N,
        transcendentals=B_pad * N,
        bytes_accessed=int(sub_p.size * 2 + rev_p.size * 2 + B_pad * N * 4
                           + wq_t.size * 2 + bq_s.size * 4 + wk_m.size * 4),
    )

    out_p = pl.pallas_call(
        rank_net_kernel,
        out_shape=jax.ShapeDtypeStruct((B_pad, 1, N), f32),
        grid=(B_pad // bt,),
        in_specs=[
            pl.BlockSpec((bt, T), lambda i: (i, 0)),        # submitter tile (bf16)
            pl.BlockSpec((bt, N, T), lambda i: (i, 0, 0)),  # reviewer tile (bf16)
            pl.BlockSpec((T, A), lambda i: (0, 0)),         # W_Q^T (pre-scaled, bf16)
            pl.BlockSpec((1, A), lambda i: (0, 0)),         # b_Q   (pre-scaled, f32)
            pl.BlockSpec((A, T), lambda i: (0, 0)),         # W_K   (torch layout, f32)
        ],
        out_specs=pl.BlockSpec((bt, 1, N), lambda i: (i, 0, 0)),
        compiler_params=pltpu.CompilerParams(
            dimension_semantics=("parallel",),
            vmem_limit_bytes=vmem_limit),
        cost_estimate=cost,
    )(sub_p, rev_p, wq_t, bq_s, wk_m)

    # Strip batch padding; shape is already the torch (B, 1, N).
    return out_p[:B]


def reference_forward(submitter_emb, reviewer_emb, w_q, b_q, w_k, b_k):
    a = w_q.shape[0]
    q = submitter_emb @ w_q.T + b_q                          # (B, A)
    k = jnp.einsum("bnt,at->bna", reviewer_emb, w_k) + b_k   # (B, N, A)
    e = jnp.einsum("ba,bna->bn", q, k) / math.sqrt(a)
    return jax.nn.softmax(e, axis=-1)[:, None, :]


if __name__ == "__main__":
    # Shapes consistent with the module: num_topics = 25 (hard-coded in
    # Rank_Net.__init__), attention_matrix_size = 32, batch = 2, 8 reviewers.
    B, N, T, A = 2, 8, 25, 32

    key = jax.random.PRNGKey(0)
    k_sub, k_rev, k_wq, k_bq, k_wk, k_bk = jax.random.split(key, 6)

    submitter_emb = jax.random.normal(k_sub, (B, T), dtype=jnp.float32)
    reviewer_emb = jax.random.normal(k_rev, (B, N, T), dtype=jnp.float32)

    # Deterministic synthetic parameter init (uniform like nn.Linear default).
    bound = 1.0 / math.sqrt(T)
    w_q = jax.random.uniform(k_wq, (A, T), jnp.float32, -bound, bound)
    b_q = jax.random.uniform(k_bq, (A,), jnp.float32, -bound, bound)
    w_k = jax.random.uniform(k_wk, (A, T), jnp.float32, -bound, bound)
    b_k = jax.random.uniform(k_bk, (A,), jnp.float32, -bound, bound)

    out = rank_net_forward(submitter_emb, reviewer_emb, w_q, b_q, w_k, b_k)
    out = jax.block_until_ready(out)

    ref = reference_forward(submitter_emb, reviewer_emb, w_q, b_q, w_k, b_k)
    assert out.shape == (B, 1, N)
    # bf16 streaming of the embeddings -> ~1e-2-level tolerance vs f32 reference.
    assert jnp.allclose(out, ref, atol=2e-2, rtol=2e-2)
    # Exact in-kernel normalization -> rows sum to 1 tightly.
    assert jnp.allclose(jnp.sum(out, axis=-1), 1.0, atol=1e-3)

    print("KERNEL_OK")
</pallas_src>

<mosaic_0001>
module attributes {stable_mosaic.version = 11 : i64} {
  func.func @rank_net_kernel(%arg0: i32, %arg1: memref<8x25xbf16, #tpu.memory_space<vmem>>, %arg2: memref<8x8x25xbf16, #tpu.memory_space<vmem>>, %arg3: memref<25x32xbf16, #tpu.memory_space<vmem>>, %arg4: memref<1x32xf32, #tpu.memory_space<vmem>>, %arg5: memref<32x25xf32, #tpu.memory_space<vmem>>, %arg6: memref<8x1x8xf32, #tpu.memory_space<vmem>>) attributes {dimension_semantics = [#tpu.dimension_semantics<parallel>], iteration_bounds = array<i64: 1>, scalar_prefetch = 0 : i64, scratch_operands = 0 : i64, tpu.core_type = #tpu.core_type<tc>, window_params = [{transform_indices = @transform_0, window_bounds = array<i64: 8, 25>}, {transform_indices = @transform_1, window_bounds = array<i64: 8, 8, 25>}, {pipeline_mode = #tpu.pipeline_mode<synchronous>, transform_indices = @transform_2, window_bounds = array<i64: 25, 32>}, {pipeline_mode = #tpu.pipeline_mode<synchronous>, transform_indices = @transform_3, window_bounds = array<i64: 1, 32>}, {pipeline_mode = #tpu.pipeline_mode<synchronous>, transform_indices = @transform_4, window_bounds = array<i64: 32, 25>}, {transform_indices = @transform_5, window_bounds = array<i64: 8, 1, 8>}]} {
    %c0 = arith.constant 0 : index
    %c0_0 = arith.constant 0 : index
    %0 = vector.load %arg1[%c0, %c0_0] : memref<8x25xbf16, #tpu.memory_space<vmem>>, vector<8x25xbf16>
    %c0_1 = arith.constant 0 : index
    %c0_2 = arith.constant 0 : index
    %c0_3 = arith.constant 0 : index
    %1 = vector.load %arg2[%c0_1, %c0_2, %c0_3] : memref<8x8x25xbf16, #tpu.memory_space<vmem>>, vector<8x8x25xbf16>
    %c0_4 = arith.constant 0 : index
    %c0_5 = arith.constant 0 : index
    %2 = vector.load %arg3[%c0_4, %c0_5] : memref<25x32xbf16, #tpu.memory_space<vmem>>, vector<25x32xbf16>
    %c0_6 = arith.constant 0 : index
    %c0_7 = arith.constant 0 : index
    %3 = vector.load %arg4[%c0_6, %c0_7] : memref<1x32xf32, #tpu.memory_space<vmem>>, vector<1x32xf32>
    %c0_8 = arith.constant 0 : index
    %c0_9 = arith.constant 0 : index
    %4 = vector.load %arg5[%c0_8, %c0_9] : memref<32x25xf32, #tpu.memory_space<vmem>>, vector<32x25xf32>
    %cst = arith.constant dense<0.000000e+00> : vector<8x32xf32>
    %5 = tpu.matmul %0, %2, %cst {dimension_numbers = #tpu.dot_dimension_numbers<[1], [0], [0], [1], [0, 0, 1, 1], [], []>} : vector<8x25xbf16>, vector<25x32xbf16>, vector<8x32xf32> -> vector<8x32xf32>
    %6 = vector.broadcast %3 : vector<1x32xf32> to vector<8x32xf32>
    %7 = arith.addf %5, %6 : vector<8x32xf32>
    %cst_10 = arith.constant dense<0.000000e+00> : vector<8x25xf32>
    %8 = tpu.matmul %7, %4, %cst_10 {dimension_numbers = #tpu.dot_dimension_numbers<[1], [0], [0], [1], [0, 0, 1, 1], [], []>} : vector<8x32xf32>, vector<32x25xf32>, vector<8x25xf32> -> vector<8x25xf32>
    %9 = arith.truncf %8 : vector<8x25xf32> to vector<8x25xbf16>
    %10 = vector.shape_cast %9 : vector<8x25xbf16> to vector<8x1x25xbf16>
    "tpu.trace_start"() <{level = 10 : i32, message = "bqt,bnt->bqn"}> : () -> ()
    %cst_11 = arith.constant dense<0.000000e+00> : vector<8x1x8xf32>
    %11 = tpu.matmul %10, %1, %cst_11 {dimension_numbers = #tpu.dot_dimension_numbers<[2], [2], [1], [1], [0, 0, 0, 1, 1, 1], [0], [0]>} : vector<8x1x25xbf16>, vector<8x8x25xbf16>, vector<8x1x8xf32> -> vector<8x1x8xf32>
    "tpu.trace_stop"() : () -> ()
    %cst_12 = arith.constant dense<0xFF800000> : vector<8x1xf32>
    %12 = vector.multi_reduction <maximumf>, %11, %cst_12 [2] : vector<8x1x8xf32> to vector<8x1xf32>
    %13 = vector.shape_cast %12 : vector<8x1xf32> to vector<8x1x1xf32>
    %14 = vector.broadcast %13 : vector<8x1x1xf32> to vector<8x1x8xf32>
    %15 = arith.subf %11, %14 : vector<8x1x8xf32>
    %16 = math.exp %15 : vector<8x1x8xf32>
    %cst_13 = arith.constant dense<0.000000e+00> : vector<8x1xf32>
    %17 = vector.multi_reduction <add>, %16, %cst_13 [2] : vector<8x1x8xf32> to vector<8x1xf32>
    %18 = vector.shape_cast %17 : vector<8x1xf32> to vector<8x1x1xf32>
    %19 = vector.broadcast %18 : vector<8x1x1xf32> to vector<8x1x8xf32>
    %20 = arith.divf %16, %19 : vector<8x1x8xf32>
    %c0_14 = arith.constant 0 : index
    %c0_15 = arith.constant 0 : index
    %c0_16 = arith.constant 0 : index
    %21 = vector.load %arg6[%c0_14, %c0_15, %c0_16] : memref<8x1x8xf32, #tpu.memory_space<vmem>>, vector<8x1x8xf32>
    tpu.vector_store %arg6[%c0_14, %c0_15, %c0_16], %20 {strides = array<i32>} : memref<8x1x8xf32, #tpu.memory_space<vmem>>, vector<8x1x8xf32>,
    return
  }
  func.func @transform_0(%arg0: i32) -> (i32, i32) {
    %c0_i32 = arith.constant 0 : i32
    %c0_i32_0 = arith.constant 0 : i32
    return %arg0, %c0_i32 : i32, i32
  }
  func.func @transform_1(%arg0: i32) -> (i32, i32, i32) {
    %c0_i32 = arith.constant 0 : i32
    %c0_i32_0 = arith.constant 0 : i32
    %c0_i32_1 = arith.constant 0 : i32
    return %arg0, %c0_i32, %c0_i32_0 : i32, i32, i32
  }
  func.func @transform_2(%arg0: i32) -> (i32, i32) {
    %c0_i32 = arith.constant 0 : i32
    %c0_i32_0 = arith.constant 0 : i32
    %c0_i32_1 = arith.constant 0 : i32
    return %c0_i32, %c0_i32_0 : i32, i32
  }
  func.func @transform_3(%arg0: i32) -> (i32, i32) {
    %c0_i32 = arith.constant 0 : i32
    %c0_i32_0 = arith.constant 0 : i32
    %c0_i32_1 = arith.constant 0 : i32
    return %c0_i32, %c0_i32_0 : i32, i32
  }
  func.func @transform_4(%arg0: i32) -> (i32, i32) {
    %c0_i32 = arith.constant 0 : i32
    %c0_i32_0 = arith.constant 0 : i32
    %c0_i32_1 = arith.constant 0 : i32
    return %c0_i32, %c0_i32_0 : i32, i32
  }
  func.func @transform_5(%arg0: i32) -> (i32, i32, i32) {
    %c0_i32 = arith.constant 0 : i32
    %c0_i32_0 = arith.constant 0 : i32
    %c0_i32_1 = arith.constant 0 : i32
    return %arg0, %c0_i32, %c0_i32_0 : i32, i32, i32
  }
}

</mosaic_0001>

<bundles_post_ra>
// kernel: tpu_custom_call.1
= control target key start
LH: loop header
LB: loop body
LE: loop exit
PB: predicated region body
PF: predicated region fallthrough
CT: control target
= control target key end

     0   :  { %10 = vsyncpa [#allocation3], 0  ;;  %s1261_s0 = inlined_call_operand.hbm [shape: bf16[8,25], index: 0, kind: input, shape index: {}]   ;;  %s1262_s1 = inlined_call_operand.hbm [shape: bf16[8,8,25], index: 1, kind: input, shape index: {}]   ;;  %s1263_s2 = inlined_call_operand.hbm [shape: bf16[25,32], index: 2, kind: input, shape index: {}]   ;;  %s1264_s3 = inlined_call_operand.vmem [shape: f32[1,32], index: 3, kind: input, shape index: {}]   ;;  %s1265_s4 = inlined_call_operand.hbm [shape: f32[32,25], index: 4, kind: input, shape index: {}]   ;;  %s1266_s5 = inlined_call_operand.hbm [shape: f32[8,1,8], index: 5, kind: output, shape index: {}]  }
   0x1   :  { %11 = vsyncpa [#allocation6], 0 }
   0x2   :  { %12 = vsyncpa [#allocation9], 0 }
   0x3   :  { %13 = vsyncpa [#allocation4], 0  ;;  %s1075_s18 = smov [#allocation5]   ;;  %s957_s22 = scalar_lea.hbm %s1262_s1, 512 }
   0x4   :  { %s29_s19 = sshll.u32 %s1075_s18, 4  ;;  %p958_p0 = scmp.ne.s32.totalorder %s1262_s1, %s957_s22  ;;  %s30_s19 = int_to_ptr.vmem [resolvable:$true] %s29_s19 }
   0x5   :  { %p961_p1 = scmp.lt.u32.totalorder %s957_s22, %s1262_s1 }
   0x7   :  { %p963_p2 = pnand %p961_p1, %p958_p0 }
   0x9   :  { %966 = shalt.err (!%p963_p2)
}
   0xa   :  { %s967_s27 = scalar_lea.vmem %s30_s19, 512  ;;  %p972_p4 = scmp.lt.s32.totalorder %s30_s19, %s30_s19 }
   0xb   :  { %p968_p3 = scmp.ne.s32.totalorder %s30_s19, %s967_s27  ;;  %p973_p5 = scmp.lt.s32.totalorder %s967_s27, %s967_s27 }
   0xd   :  { %p974_p6 = por %p973_p5, %p972_p4 }
   0xf   :  { %p975_p7 = pnand %p974_p6, %p968_p3 }
  0x11   :  { %978 = shalt.err (!%p975_p7)
}
  0x12   :  { %s1076_s28 = smov 64   ;;  %s1077_s29 = smov 4  }
  0x13   :  { %35 = dma.hbm_to_vmem [thread:$0]  %s1262_s1, 512, %s30_s19, [#allocation6], %s1076_s28, %s1076_s28, %s1077_s29  }
  0x14   :  { %s1078_s7 = smov [#allocation2]   ;;  %s1079_s9 = smov [#allocation7]  }
  0x15   :  { %s20_s8 = sshll.u32 %s1078_s7, 4  ;;  %s41_s10 = sshll.u32 %s1079_s9, 4  ;;  %s21_s8 = int_to_ptr.vmem [resolvable:$true] %s20_s8  ;;  %s42_s10 = int_to_ptr.vmem [resolvable:$true] %s41_s10 }
  0x16   :  { %s979_s13 = scalar_lea.hbm %s1261_s0, 64 }
  0x17   :  { %p980_p8 = scmp.ne.s32.totalorder %s1261_s0, %s979_s13  ;;  %p983_p9 = scmp.lt.u32.totalorder %s979_s13, %s1261_s0 }
  0x19   :  { %p985_p10 = pnand %p983_p9, %p980_p8 }
  0x1b   :  { %988 = shalt.err (!%p985_p10)
}
  0x1c   :  { %s989_s1 = scalar_lea.vmem %s21_s8, 64  ;;  %p994_p12 = scmp.lt.s32.totalorder %s21_s8, %s21_s8 }
  0x1d   :  { %p990_p11 = scmp.ne.s32.totalorder %s21_s8, %s989_s1  ;;  %p995_p13 = scmp.lt.s32.totalorder %s989_s1, %s989_s1 }
  0x1f   :  { %p996_p0 = por %p995_p13, %p994_p12 }
  0x21   :  { %p997_p1 = pnand %p996_p0, %p990_p11 }
  0x23   :  { %1000 = shalt.err (!%p997_p1)
}
  0x24   :  { %23 = dma.hbm_to_vmem [thread:$0]  %s1261_s0, 64, %s21_s8, [#allocation3]  }
  0x25   :  { %s1001_s22 = scalar_lea.hbm %s1263_s2, 256 }
  0x26   :  { %p1002_p2 = scmp.ne.s32.totalorder %s1263_s2, %s1001_s22  ;;  %p1005_p3 = scmp.lt.u32.totalorder %s1001_s22, %s1263_s2 }
  0x28   :  { %p1007_p4 = pnand %p1005_p3, %p1002_p2 }
  0x2a   :  { %1010 = shalt.err (!%p1007_p4)
}
  0x2b   :  { %s1011_s27 = scalar_lea.vmem %s42_s10, 256  ;;  %p1016_p6 = scmp.lt.s32.totalorder %s42_s10, %s42_s10 }
  0x2c   :  { %p1012_p5 = scmp.ne.s32.totalorder %s42_s10, %s1011_s27  ;;  %p1017_p7 = scmp.lt.s32.totalorder %s1011_s27, %s1011_s27 }
  0x2e   :  { %p1018_p8 = por %p1017_p7, %p1016_p6 }
  0x30   :  { %p1019_p9 = pnand %p1018_p8, %p1012_p5 }
  0x32   :  { %1022 = shalt.err (!%p1019_p9)
}
  0x33   :  { %47 = dma.hbm_to_vmem [thread:$0]  %s1263_s2, 256, %s42_s10, [#allocation6], %s1076_s28, %s1076_s28, %s1077_s29  }
  0x34   :  { %s1080_s6 = smov [#allocation8]   ;;  %s1023_s11 = scalar_lea.hbm %s1265_s4, 512 }
  0x35   :  { %s55_s7 = sshll.u32 %s1080_s6, 4  ;;  %p1024_p10 = scmp.ne.s32.totalorder %s1265_s4, %s1023_s11  ;;  %s56_s7 = int_to_ptr.vmem [resolvable:$true] %s55_s7 }
  0x36   :  { %p1027_p11 = scmp.lt.u32.totalorder %s1023_s11, %s1265_s4 }
  0x38   :  { %p1029_p12 = pnand %p1027_p11, %p1024_p10 }
  0x3a   :  { %1032 = shalt.err (!%p1029_p12)
}
  0x3b   :  { %s1033_s16 = scalar_lea.vmem %s56_s7, 512  ;;  %p1038_p0 = scmp.lt.s32.totalorder %s56_s7, %s56_s7 }
  0x3c   :  { %p1034_p13 = scmp.ne.s32.totalorder %s56_s7, %s1033_s16  ;;  %p1039_p1 = scmp.lt.s32.totalorder %s1033_s16, %s1033_s16 }
  0x3e   :  { %p1040_p2 = por %p1039_p1, %p1038_p0 }
  0x40   :  { %p1041_p3 = pnand %p1040_p2, %p1034_p13 }
  0x42   :  { %1044 = shalt.err (!%p1041_p3)
}
  0x43   :  { %s1081_s2 = smov 128   ;;  %s1082_s28 = smov 8  }
  0x44   :  { %61 = dma.hbm_to_vmem [thread:$0]  %s1265_s4, 512, %s56_s7, [#allocation9], %s1081_s2, %s1081_s2, %s1082_s28  }
  0x45   :  { %1067 = dma.done.wait [#allocation3], 64  }
  0x46   :  { %1068 = vsyncadd [#allocation3], 4294967232 }
  0x47   :  { %1069 = dma.done.wait [#allocation6], 768  }
  0x48   :  { %1070 = vsyncadd [#allocation6], 4294966528 }
  0x49   :  { %1071 = dma.done.wait [#allocation9], 512  }
  0x4a   :  { %1072 = vsyncadd [#allocation9], 4294966784  ;;  %v1083_v0 = vmov 0.0   ;;  %vm114_vm0 = vcmask 1043456   ;;  %vm1084_vm1 = vmmov 0   ;;  %v1085_v1 = vmov 0.0|0.0  }
  0x4b   :  { %834 = vmatprep.subr.bf16.mxu0 %v1083_v0  ;;  %838 = vmatprep.mubr.msk.bf16.mxu0 %vm1084_vm1, %v1083_v0  ;;  %vm115_vm2 = vcmask 1044480   ;;  %v1086_v2 = vmov 65535   ;;  %v923_v4 = vld [vmem:[#allocation7] sm:$0xff]   ;;  %v924_v6 = vld [vmem:[#allocation7 + $0x8] sm:$0x1f]   ;;  %v89_v7 = vld [vmem:[#allocation8] sm:$0xff]  ;;  %v240_v27 = vlaneseq }
  0x4c   :  { %901 = vmatprep.subr.bf16.mxu1 %v1085_v1  ;;  %850 = vmatprep.mubr.msk.f32.mxu1 %vm1084_vm1, %v1083_v0  ;;  %v116_v3 = vsel %vm114_vm0, 4294967295, %v1086_v2  ;;  %v90_v8 = vld [vmem:[#allocation8 + $0x8] sm:$0xff]  ;;  %vm110_vm3 = vcmask 203776   ;;  %v91_v12 = vld [vmem:[#allocation8 + $0x10] sm:$0xff]  ;;  %v92_v13 = vld [vmem:[#allocation8 + $0x18] sm:$0xff]  ;;  %vm161_vm4 = vcmask 261120  }
  0x4d   :  { %v117_v5 = vsel %vm115_vm2, %v116_v3, 0  ;;  %835 = vmatpush3.bf16.msra.mxu0 %v923_v4  ;;  %v902_v10 = vpack.c.bf16 %v90_v8, %v89_v7  ;;  %v75_v11 = vld [vmem:[#allocation2] sm:$0xf]  ;;  %v905_v14 = vpack.c.bf16 %v92_v13, %v91_v12  ;;  %v76_v21 = vld [vmem:[#allocation5] sm:$0xf]  ;;  %v241_v29 = vshrl.u32 %v240_v27, 7 }
  0x4e   :  { %836 = vmatprep.subr.bf16.mxu0 %v1083_v0  ;;  %v119_v9 = vand.u32 %v924_v6, %v117_v5  ;;  %v793_v15 = vld [vmem:[%s1264_s3] ss:$0 sm:$0xff]  ;;  %v278_v22 = vsel %vm110_vm3, %v76_v21, 0  ;;  %v77_v23 = vld [vmem:[#allocation5 + $0x4] sm:$0xf]  ;;  %vm677_vm5 = vcmask 57344  }
  0x4f   :  { %903 = vmatpush3.bf16.msra.mxu1 %v902_v10  ;;  %v329_v24 = vsel %vm110_vm3, %v77_v23, 0  ;;  %v1087_v25 = vmov 1966171168   ;;  %v272_v37 = vsub.s32 0, %v241_v29  ;;  %v78_v38 = vld [vmem:[#allocation5 + $0x8] sm:$0xf] }
  0x50   :  { %904 = vmatprep.subr.bf16.mxu1 %v1085_v1  ;;  %v238_v26 = vunpack.c.l.s4 %v1087_v25  ;;  %v380_v43 = vsel %vm110_vm3, %v78_v38, 0  ;;  %v79_v44 = vld [vmem:[#allocation5 + $0xc] sm:$0xf]  ;;  %v80_v50 = vld [vmem:[#allocation5 + $0x10] sm:$0xf]  ;;  %s1088_s3 = smov [#allocation10]  }
  0x51   :  { %837 = vmatpush3.bf16.msra.mxu0 %v119_v9  ;;  %v431_v48 = vsel %vm110_vm3, %v79_v44, 0  ;;  %v482_v54 = vsel %vm110_vm3, %v80_v50, 0  ;;  %v81_v55 = vld [vmem:[#allocation5 + $0x14] sm:$0xf]  ;;  %v82_v60 = vld [vmem:[#allocation5 + $0x18] sm:$0xf] }
  0x52   :  { %853 = vmatprep.subr.bf16.mxu0 %v1083_v0  ;;  %v239_v28 = vunpack.c.0.s8 %v238_v26  ;;  %v533_v58 = vsel %vm110_vm3, %v81_v55, 0  ;;  %v584_v1 = vsel %vm110_vm3, %v82_v60, 0  ;;  %v83_v2 = vld [vmem:[#allocation5 + $0x1c] sm:$0xf]  ;;  %s779_s1 = sshll.u32 %s1088_s3, 4  ;;  %s780_s1 = int_to_ptr.vmem [resolvable:$true] %s779_s1 }
  0x53   :  { %906 = vmatpush3.bf16.msra.mxu1 %v905_v14  ;;  %v635_v5 = vsel %vm110_vm3, %v83_v2, 0  ;;  %s1045_s18 = scalar_lea.vmem %s780_s1, 128  ;;  %p1050_p5 = scmp.lt.s32.totalorder %s780_s1, %s780_s1 }
  0x54   :  { %839 = vmatmul.mubr.msk.bf16.vlgmr.msra.gmra.mrb[0].mxu0 %vm110_vm3, %v75_v11  ;;  %859 = vmatprep.subr.bf16.mxu1 %v1083_v0  ;;  %v242_v30 = vsub.s32 %v239_v28, %v241_v29  ;;  %p1046_p4 = scmp.ne.s32.totalorder %s780_s1, %s1045_s18  ;;  %p1051_p6 = scmp.lt.s32.totalorder %s1045_s18, %s1045_s18 }
  0x55   :  { %855 = vmatprep.mubr.msk.bf16.mxu0 %vm1084_vm1, %v1083_v0 }
  0x56   :  { %p1052_p7 = por %p1051_p6, %p1050_p5 }
  0x58   :  { %p1053_p8 = pnand %p1052_p7, %p1046_p4 }
  0x5a   :  { %854 = vmatpush3.bf16.xpose.msra.mxu0 %v278_v22 }
  0x5b   :  { %865 = vmatprep.subr.bf16.mxu0 %v1083_v0 }
 0x127   :  { %v155_v16 = vpop.f32.mrb[0].mxu0 }
 0x128   :  { %v156_v17 = vadd.f32 %v793_v15, %v155_v16  ;;  %v840_v18 = vpop.f32.mrb[1].mxu0 }
 0x129   :  { %v158_v19 = vpop.f32.mrb[2].mxu0 }
 0x12a   :  { %v841_v20 = vpop.f32.mrb[3].mxu0  ;;  %851 = vmatmul.mubr.msk.f32.vlgmr.msra.gmra.mrb[0].mxu1 %vm161_vm4, %v156_v17 }
 0x12b   :  { %861 = vmatprep.mubr.msk.bf16.mxu1 %vm1084_vm1, %v1083_v0  ;;  %860 = vmatpush3.bf16.xpose.msra.mxu1 %v329_v24 }
 0x12c   :  { %871 = vmatprep.subr.bf16.mxu1 %v1083_v0 }
 0x1fd   :  { %v231_v31 = vpop.f32.mrb[0].mxu1 }
 0x1fe   :  { %v235_v32 = vpack.c.bf16 %v231_v31, %v231_v31  ;;  %v852_v33 = vpop.f32.mrb[1].mxu1 }
 0x200   :  { %v243_v34 = vrot.slane %v235_v32, %v242_v30 }
 0x202   :  { %v244_v35 = vcombine.high %v243_v34, %v243_v34  ;;  %v251_v36 = vrot.slane %v243_v34, %v242_v30 }
 0x204   :  { %v262_v39 = vunpack.i.h.s16 %v251_v36  ;;  %v798_v40 = vpack.i.b16 %v251_v36, %v251_v36  ;;  %v258_v41 = vrot.slane %v244_v35, %v242_v30  ;;  %v259_v51 = vcombine.high %v251_v36, %v251_v36 }
 0x206   :  { %v273_v42 = vrot.slane %v798_v40, %v272_v37  ;;  %v320_v45 = vpack.i.b16 %v262_v39, %v262_v39  ;;  %v264_v46 = vunpack.i.h.s16 %v258_v41  ;;  %v801_v49 = vpack.i.b16 %v258_v41, %v258_v41 }
 0x207   :  { %v266_v56 = vunpack.i.h.s16 %v259_v51  ;;  %v804_v59 = vpack.i.b16 %v259_v51, %v259_v51  ;;  %v260_v61 = vcombine.high %v258_v41, %v258_v41 }
 0x208   :  { %856 = vmatmul.mubr.msk.bf16.vlgmr.msra.gmra.mrb[4].mxu0 %vm110_vm3, %v273_v42  ;;  %v324_v47 = vrot.slane %v320_v45, %v272_v37  ;;  %v422_v52 = vpack.i.b16 %v264_v46, %v264_v46  ;;  %v375_v53 = vrot.slane %v801_v49, %v272_v37 }
 0x209   :  { %866 = vmatpush3.bf16.xpose.msra.mxu0 %v380_v43  ;;  %867 = vmatprep.mubr.msk.bf16.mxu0 %vm1084_vm1, %v1083_v0  ;;  %v524_v62 = vpack.i.b16 %v266_v56, %v266_v56  ;;  %v477_v63 = vrot.slane %v804_v59, %v272_v37  ;;  %v268_v3 = vunpack.i.h.s16 %v260_v61  ;;  %v807_v6 = vpack.i.b16 %v260_v61, %v260_v61 }
 0x20a   :  { %877 = vmatprep.subr.bf16.mxu0 %v1083_v0  ;;  %862 = vmatmul.mubr.msk.bf16.vlgmr.msra.gmra.mrb[4].mxu1 %vm110_vm3, %v324_v47  ;;  %v426_v57 = vrot.slane %v422_v52, %v272_v37 }
 0x20b   :  { %872 = vmatpush3.bf16.xpose.msra.mxu1 %v431_v48  ;;  %873 = vmatprep.mubr.msk.bf16.mxu1 %vm1084_vm1, %v1083_v0  ;;  %v528_v4 = vrot.slane %v524_v62, %v272_v37  ;;  %v626_v7 = vpack.i.b16 %v268_v3, %v268_v3  ;;  %v579_v8 = vrot.slane %v807_v6, %v272_v37 }
 0x20c   :  { %883 = vmatprep.subr.bf16.mxu1 %v1083_v0 }
 0x20d   :  { %v630_v9 = vrot.slane %v626_v7, %v272_v37 }
 0x210   :  { %868 = vmatmul.mubr.msk.bf16.vlgmr.msra.gmra.mrb[8].mxu0 %vm110_vm3, %v375_v53 }
 0x211   :  { %878 = vmatpush3.bf16.xpose.msra.mxu0 %v482_v54  ;;  %879 = vmatprep.mubr.msk.bf16.mxu0 %vm1084_vm1, %v1083_v0 }
 0x212   :  { %889 = vmatprep.subr.bf16.mxu0 %v1083_v0  ;;  %874 = vmatmul.mubr.msk.bf16.vlgmr.msra.gmra.mrb[8].mxu1 %vm110_vm3, %v426_v57 }
 0x213   :  { %884 = vmatpush3.bf16.xpose.msra.mxu1 %v533_v58  ;;  %885 = vmatprep.mubr.msk.bf16.mxu1 %vm1084_vm1, %v1083_v0 }
 0x214   :  { %895 = vmatprep.subr.bf16.mxu1 %v1083_v0 }
 0x218   :  { %880 = vmatmul.mubr.msk.bf16.vlgmr.msra.gmra.mrb[12].mxu0 %vm110_vm3, %v477_v63 }
 0x219   :  { %890 = vmatpush3.bf16.xpose.msra.mxu0 %v584_v1  ;;  %891 = vmatprep.mubr.msk.bf16.mxu0 %vm1084_vm1, %v1083_v0 }
 0x21a   :  { %886 = vmatmul.mubr.msk.bf16.vlgmr.msra.gmra.mrb[12].mxu1 %vm110_vm3, %v528_v4 }
 0x21b   :  { %896 = vmatpush3.bf16.xpose.msra.mxu1 %v635_v5  ;;  %897 = vmatprep.mubr.msk.bf16.mxu1 %vm1084_vm1, %v1083_v0 }
 0x220   :  { %892 = vmatmul.mubr.msk.bf16.vlgmr.msra.gmra.mrb[16].mxu0 %vm110_vm3, %v579_v8 }
 0x222   :  { %898 = vmatmul.mubr.msk.bf16.vlgmr.msra.gmra.mrb[16].mxu1 %vm110_vm3, %v630_v9 }
 0x2db   :  { %v314_v10 = vpop.f32.mrb[4].mxu0 }
 0x2dc   :  { %v857_v11 = vpop.f32.mrb[5].mxu0  ;;  %v678_v12 = vsel %vm677_vm5, %v314_v10, -inf }
 0x2dd   :  { %679 = vmax.xlane.f32.xlu0 %v678_v12  ;;  %v317_v13 = vpop.f32.mrb[6].mxu0  ;;  %v365_v14 = vpop.f32.mrb[4].mxu1 }
 0x2de   :  { %v858_v15 = vpop.f32.mrb[7].mxu0  ;;  %v863_v16 = vpop.f32.mrb[5].mxu1  ;;  %v681_v0 = vsel %vm677_vm5, %v365_v14, -inf }
 0x2df   :  { %v368_v17 = vpop.f32.mrb[6].mxu1 }
 0x2e0   :  { %v864_v18 = vpop.f32.mrb[7].mxu1 }
 0x2e1   :  { %682 = vmax.xlane.f32.xlu0 %v681_v0 }
 0x2e3   :  { %v416_v19 = vpop.f32.mrb[8].mxu0 }
 0x2e4   :  { %v869_v20 = vpop.f32.mrb[9].mxu0  ;;  %v684_v21 = vsel %vm677_vm5, %v416_v19, -inf }
 0x2e5   :  { %685 = vmax.xlane.f32.xlu1 %v684_v21  ;;  %v419_v22 = vpop.f32.mrb[10].mxu0  ;;  %v467_v23 = vpop.f32.mrb[8].mxu1 }
 0x2e6   :  { %v870_v24 = vpop.f32.mrb[11].mxu0  ;;  %v875_v25 = vpop.f32.mrb[9].mxu1  ;;  %v687_v27 = vsel %vm677_vm5, %v467_v23, -inf }
 0x2e7   :  { %v470_v26 = vpop.f32.mrb[10].mxu1 }
 0x2e8   :  { %v876_v28 = vpop.f32.mrb[11].mxu1 }
 0x2e9   :  { %688 = vmax.xlane.f32.xlu1 %v687_v27 }
 0x2eb   :  { %v518_v29 = vpop.f32.mrb[12].mxu0 }
 0x2ec   :  { %v881_v30 = vpop.f32.mrb[13].mxu0  ;;  %v690_v31 = vsel %vm677_vm5, %v518_v29, -inf }
 0x2ed   :  { %691 = vmax.xlane.f32.xlu0 %v690_v31  ;;  %v521_v32 = vpop.f32.mrb[14].mxu0  ;;  %v569_v33 = vpop.f32.mrb[12].mxu1 }
 0x2ee   :  { %v882_v34 = vpop.f32.mrb[15].mxu0  ;;  %v887_v35 = vpop.f32.mrb[13].mxu1  ;;  %v693_v36 = vsel %vm677_vm5, %v569_v33, -inf }
 0x2ef   :  { %v572_v37 = vpop.f32.mrb[14].mxu1  ;;  %694 = vmax.xlane.f32.xlu1 %v693_v36 }
 0x2f0   :  { %v888_v38 = vpop.f32.mrb[15].mxu1 }
 0x2f3   :  { %v620_v39 = vpop.f32.mrb[16].mxu0 }
 0x2f4   :  { %v893_v40 = vpop.f32.mrb[17].mxu0  ;;  %v696_v41 = vsel %vm677_vm5, %v620_v39, -inf }
 0x2f5   :  { %697 = vmax.xlane.f32.xlu0 %v696_v41  ;;  %v623_v42 = vpop.f32.mrb[18].mxu0  ;;  %v671_v43 = vpop.f32.mrb[16].mxu1 }
 0x2f6   :  { %v894_v44 = vpop.f32.mrb[19].mxu0  ;;  %v899_v45 = vpop.f32.mrb[17].mxu1  ;;  %v699_v46 = vsel %vm677_vm5, %v671_v43, -inf }
 0x2f7   :  { %v674_v47 = vpop.f32.mrb[18].mxu1  ;;  %700 = vmax.xlane.f32.xlu1 %v699_v46 }
 0x2f8   :  { %v900_v48 = vpop.f32.mrb[19].mxu1 }
 0x36a   :  { %v680_v49 = vpop.xlane.xlu0 %679 }
 0x36b   :  { %v702_v50 = vsub.f32 %v314_v10, %v680_v49 }
 0x36d   :  { %v710_v51 = vmul.f32 1.442695, %v702_v50 }
 0x36e   :  { %v683_v52 = vpop.xlane.xlu0 %682 }
 0x36f   :  { %925 = vpow2.f32 %v710_v51  ;;  %v703_v53 = vsub.f32 %v365_v14, %v683_v52 }
 0x371   :  { %v712_v54 = vmul.f32 1.442695, %v703_v53 }
 0x372   :  { %v686_v55 = vpop.xlane.xlu1 %685 }
 0x373   :  { %927 = vpow2.f32 %v712_v54  ;;  %v704_v56 = vsub.f32 %v416_v19, %v686_v55 }
 0x375   :  { %v714_v57 = vmul.f32 1.442695, %v704_v56 }
 0x376   :  { %v689_v58 = vpop.xlane.xlu1 %688 }
 0x377   :  { %929 = vpow2.f32 %v714_v57  ;;  %v705_v59 = vsub.f32 %v467_v23, %v689_v58 }
 0x379   :  { %v926_v60 = vpop.eup %925  ;;  %v716_v61 = vmul.f32 1.442695, %v705_v59 }
 0x37a   :  { %v692_v62 = vpop.xlane.xlu0 %691  ;;  %v726_v63 = vsel %vm677_vm5, %v926_v60, 0.0 }
 0x37b   :  { %931 = vpow2.f32 %v716_v61  ;;  %v706_v1 = vsub.f32 %v518_v29, %v692_v62  ;;  %727 = vadd.xlane.f32.xlu0 %v726_v63 }
 0x37c   :  { %v695_v4 = vpop.xlane.xlu1 %694 }
 0x37d   :  { %v928_v2 = vpop.eup %927  ;;  %v718_v3 = vmul.f32 1.442695, %v706_v1  ;;  %v707_v5 = vsub.f32 %v569_v33, %v695_v4 }
 0x37e   :  { %v729_v6 = vsel %vm677_vm5, %v928_v2, 0.0 }
 0x37f   :  { %933 = vpow2.f32 %v718_v3  ;;  %730 = vadd.xlane.f32.xlu1 %v729_v6  ;;  %v720_v7 = vmul.f32 1.442695, %v707_v5 }
 0x381   :  { %v930_v8 = vpop.eup %929  ;;  %935 = vpow2.f32 %v720_v7 }
 0x382   :  { %v698_v9 = vpop.xlane.xlu0 %697  ;;  %v732_v10 = vsel %vm677_vm5, %v930_v8, 0.0 }
 0x383   :  { %v708_v11 = vsub.f32 %v620_v39, %v698_v9  ;;  %733 = vadd.xlane.f32.xlu0 %v732_v10 }
 0x384   :  { %v701_v14 = vpop.xlane.xlu1 %700 }
 0x385   :  { %v932_v12 = vpop.eup %931  ;;  %v722_v13 = vmul.f32 1.442695, %v708_v11  ;;  %v709_v15 = vsub.f32 %v671_v43, %v701_v14 }
 0x386   :  { %v735_v16 = vsel %vm677_vm5, %v932_v12, 0.0 }
 0x387   :  { %937 = vpow2.f32 %v722_v13  ;;  %736 = vadd.xlane.f32.xlu1 %v735_v16  ;;  %v724_v17 = vmul.f32 1.442695, %v709_v15 }
 0x389   :  { %v934_v0 = vpop.eup %933  ;;  %939 = vpow2.f32 %v724_v17 }
 0x38a   :  { %v738_v18 = vsel %vm677_vm5, %v934_v0, 0.0 }
 0x38b   :  { %739 = vadd.xlane.f32.xlu0 %v738_v18  ;;  %v936_v19 = vpop.eup %935 }
 0x38c   :  { %v741_v20 = vsel %vm677_vm5, %v936_v19, 0.0 }
 0x38d   :  { %742 = vadd.xlane.f32.xlu1 %v741_v20 }
 0x391   :  { %v938_v21 = vpop.eup %937 }
 0x392   :  { %v744_v22 = vsel %vm677_vm5, %v938_v21, 0.0 }
 0x393   :  { %745 = vadd.xlane.f32.xlu0 %v744_v22  ;;  %v940_v23 = vpop.eup %939 }
 0x394   :  { %v747_v24 = vsel %vm677_vm5, %v940_v23, 0.0 }
 0x395   :  { %748 = vadd.xlane.f32.xlu1 %v747_v24 }
 0x408   :  { %v728_v25 = vpop.xlane.xlu0 %727 }
 0x409   :  { %941 = vrcp.f32 %v728_v25 }
 0x40c   :  { %v731_v26 = vpop.xlane.xlu1 %730 }
 0x40d   :  { %943 = vrcp.f32 %v731_v26 }
 0x410   :  { %v734_v27 = vpop.xlane.xlu0 %733 }
 0x411   :  { %945 = vrcp.f32 %v734_v27 }
 0x413   :  { %v942_v28 = vpop.eup %941 }
 0x414   :  { %v751_v29 = vmul.f32 %v942_v28, %v926_v60  ;;  %v737_v30 = vpop.xlane.xlu1 %736 }
 0x415   :  { %947 = vrcp.f32 %v737_v30 }
 0x416   :  { %766 = vst.msk [vmem:[#allocation10] sm:$0x1] %vm677_vm5, %v751_v29 }
 0x417   :  { %v944_v31 = vpop.eup %943 }
 0x418   :  { %v753_v32 = vmul.f32 %v944_v31, %v928_v2  ;;  %v740_v33 = vpop.xlane.xlu0 %739 }
 0x419   :  { %949 = vrcp.f32 %v740_v33 }
 0x41a   :  { %767 = vst.msk [vmem:[#allocation10 + $0x1] sm:$0x1] %vm677_vm5, %v753_v32  ;;  %v743_v35 = vpop.xlane.xlu1 %742 }
 0x41b   :  { %v946_v34 = vpop.eup %945  ;;  %951 = vrcp.f32 %v743_v35 }
 0x41c   :  { %v755_v36 = vmul.f32 %v946_v34, %v930_v8 }
 0x41e   :  { %768 = vst.msk [vmem:[#allocation10 + $0x2] sm:$0x1] %vm677_vm5, %v755_v36 }
 0x41f   :  { %v948_v37 = vpop.eup %947 }
 0x420   :  { %v757_v38 = vmul.f32 %v948_v37, %v932_v12  ;;  %v746_v39 = vpop.xlane.xlu0 %745 }
 0x421   :  { %953 = vrcp.f32 %v746_v39 }
 0x422   :  { %769 = vst.msk [vmem:[#allocation10 + $0x3] sm:$0x1] %vm677_vm5, %v757_v38  ;;  %v749_v41 = vpop.xlane.xlu1 %748 }
 0x423   :  { %v950_v40 = vpop.eup %949  ;;  %955 = vrcp.f32 %v749_v41 }
 0x424   :  { %v759_v42 = vmul.f32 %v950_v40, %v934_v0 }
 0x425   :  { %v952_v43 = vpop.eup %951 }
 0x426   :  { %770 = vst.msk [vmem:[#allocation10 + $0x4] sm:$0x1] %vm677_vm5, %v759_v42  ;;  %v761_v44 = vmul.f32 %v952_v43, %v936_v19 }
 0x428   :  { %771 = vst.msk [vmem:[#allocation10 + $0x5] sm:$0x1] %vm677_vm5, %v761_v44 }
 0x42b   :  { %v954_v45 = vpop.eup %953 }
 0x42c   :  { %v763_v46 = vmul.f32 %v954_v45, %v938_v21 }
 0x42d   :  { %v956_v47 = vpop.eup %955 }
 0x42e   :  { %772 = vst.msk [vmem:[#allocation10 + $0x6] sm:$0x1] %vm677_vm5, %v763_v46  ;;  %v765_v48 = vmul.f32 %v956_v47, %v940_v23 }
 0x430   :  { %773 = vst.msk [vmem:[#allocation10 + $0x7] sm:$0x1] %vm677_vm5, %v765_v48 }
 0x431   :  { %1056 = shalt.err (!%p1053_p8)
}
 0x432   :  { %s1057_s21 = scalar_lea.hbm %s1266_s5, 128 }
 0x433   :  { %p1058_p9 = scmp.ne.s32.totalorder %s1266_s5, %s1057_s21  ;;  %p1061_p10 = scmp.lt.u32.totalorder %s1057_s21, %s1266_s5 }
 0x435   :  { %p1063_p11 = pnand %p1061_p10, %p1058_p9 }
 0x437   :  { %1066 = shalt.err (!%p1063_p11)
}
 0x438   :  { %s1089_s26 = smov 16   ;;  %s1090_s27 = smov 1  }
 0x439   :  { %785 = dma.vmem_to_hbm [thread:$0]  %s780_s1, 128, %s1266_s5, [#allocation4], %s1089_s26, %s1089_s26, %s1090_s27  }
 0x43a   :  { %1073 = dma.done.wait [#allocation4], 128  }
 0x43b   :  { %1074 = vsyncadd [#allocation4], 4294967168 }
 0x43c   :  { %789 = vsyncpa [#allocation3], 1 }
 0x43d   :  { %790 = vsyncpa [#allocation6], 1 }
 0x43e   :  { %791 = vsyncpa [#allocation9], 1 }
 0x43f   :  { %792 = vsyncpa [#allocation4], 1 }

</bundles_post_ra>
